<compile_context>
chip_gen: v7x
topology: tpu7x:2x2x1
jax: 0.10.0
libtpu: 0.0.40
codegen_flags: <defaults>
</compile_context>

<pallas_src>
import math

import jax
import jax.numpy as jnp
from jax.experimental import pallas as pl
from jax.experimental.pallas import tpu as pltpu

VOCAB_FULL = 1024   # FixedEmbedding hard-codes c_in = 1024
VOCAB_K = 128       # temporal indices are <= 31; 128 rows cover every valid lookup


def _round_up(x: int, m: int) -> int:
    return (x + m - 1) // m * m


def fixed_embedding_table(d_model: int, c_in: int = VOCAB_FULL) -> jnp.ndarray:
    """Deterministic sinusoidal table, identical to FixedEmbedding.__init__."""
    position = jnp.arange(c_in, dtype=jnp.float32)[:, None]
    div_term = jnp.exp(
        jnp.arange(0, d_model, 2, dtype=jnp.float32) * -(math.log(10000.0) / d_model)
    )
    w = jnp.zeros((c_in, d_model), jnp.float32)
    w = w.at[:, 0::2].set(jnp.sin(position * div_term))
    w = w.at[:, 1::2].set(jnp.cos(position * div_term[: d_model // 2]))
    return w


def _temporal_embed_kernel(idx_ref, w_ref, o_ref):
    """out[n, :] = (sum_f onehot(idx[n, f])) @ W   -- one MXU matmul per tile.

    idx_ref : (TN, F)        int32 time-feature indices
    w_ref   : (VOCAB_K, Dp)  f32 shared sinusoidal table (lane-padded, VMEM-resident)
    o_ref   : (TN, Dp)       f32
    """
    idx = idx_ref[...]                                          # (TN, F)
    tn, n_feat = idx.shape
    k = w_ref.shape[0]

    lanes = jax.lax.broadcasted_iota(jnp.int32, (tn, k), 1)     # (TN, K), hoisted

    # Summed one-hot (integer-valued count mask <= F): exact in f32, and since
    # all FixedEmbedding tables are identical a single matmul replaces 4-5.
    onehot_sum = jnp.zeros((tn, k), jnp.float32)
    for f in range(n_feat):                                     # static unroll
        col = idx[:, f].reshape(tn, 1)                          # (TN, 1)
        onehot_sum = onehot_sum + jnp.where(lanes == col, 1.0, 0.0)

    o_ref[...] = jnp.dot(onehot_sum, w_ref[...],
                         preferred_element_type=jnp.float32)


def temporal_embedding(x_mark, w_table, *, freq="h", tile_n=1024):
    """JAX wrapper reproducing TemporalEmbedding.forward (embed_type='fixed').

    x_mark : (B, L, F) time-feature marks (F in {4, 5})
    w_table: (1024, d_model) shared FixedEmbedding sinusoidal table
    """
    B, L, F = x_mark.shape
    assert F in (4, 5), "regular time-series path expects 4 or 5 mark features"
    d_model = w_table.shape[1]

    # minute feature only participates when freq == 't' (minute_x = 0.0 otherwise)
    n_feat = 5 if (freq == "t" and F >= 5) else 4

    # TemporalEmbedding.forward casts with .long() before the per-feature lookups.
    xm = x_mark.astype(jnp.int32)

    # FixedEmbedding.forward '<1' branch, applied per embedding call (per column).
    cols = []
    for f in range(n_feat):
        col = xm[:, :, f]
        col = jnp.where(jnp.any(col < 1), col * VOCAB_FULL, col)
        cols.append(col)
    idx = jnp.stack(cols, axis=-1).reshape(B * L, n_feat).astype(jnp.int32)
    # TODO(synk): indices outside [0, VOCAB_K) (where PyTorch nn.Embedding would
    # raise and TemporalEmbedding would fall back to general_embedding via its
    # try/except) silently contribute a zero embedding here; that data-dependent
    # Python-exception fallback path has no clean Pallas equivalent.

    # Lane-dense output: pad d_model up to a multiple of 128, slice afterwards.
    d_pad = _round_up(d_model, 128)
    w = w_table[:VOCAB_K]
    if d_pad != d_model:
        w = jnp.pad(w, ((0, 0), (0, d_pad - d_model)))

    # VMEM-aware row tile: keep the double-buffered output block <= ~4 MiB each.
    N = B * L
    bytes_per_row = d_pad * 4
    tile_cap = max(8, ((4 * 1024 * 1024) // bytes_per_row) // 8 * 8)
    tile = min(tile_n, tile_cap, _round_up(N, 8))
    n_pad = _round_up(N, tile)
    if n_pad != N:
        idx = jnp.pad(idx, ((0, n_pad - N), (0, 0)))

    grid_spec = pltpu.PrefetchScalarGridSpec(
        num_scalar_prefetch=0,
        grid=(n_pad // tile,),
        in_specs=[
            pl.BlockSpec((tile, n_feat), lambda i: (i, 0)),     # indices
            pl.BlockSpec((VOCAB_K, d_pad), lambda i: (0, 0)),   # shared table (resident)
        ],
        out_specs=pl.BlockSpec((tile, d_pad), lambda i: (i, 0)),
    )

    out = pl.pallas_call(
        _temporal_embed_kernel,
        out_shape=jax.ShapeDtypeStruct((n_pad, d_pad), jnp.float32),
        grid_spec=grid_spec,
        compiler_params=pltpu.CompilerParams(
            dimension_semantics=("parallel",),
            vmem_limit_bytes=48 * 1024 * 1024),
    )(idx, w)

    return out[:N, :d_model].reshape(B, L, d_model)


if __name__ == "__main__":
    B, L, d_model = 2, 8, 32
    key = jax.random.PRNGKey(0)
    k_m, k_d, k_w, k_h, k_mi = jax.random.split(key, 5)

    # Integer time marks, all >= 1 (plain-int FixedEmbedding path, no fallback).
    month = jax.random.randint(k_m, (B, L), 1, 13)      # feature 0
    day = jax.random.randint(k_d, (B, L), 1, 32)        # feature 1
    weekday = jax.random.randint(k_w, (B, L), 1, 7)     # feature 2
    hour = jax.random.randint(k_h, (B, L), 1, 24)       # feature 3
    minute = jax.random.randint(k_mi, (B, L), 1, 4)     # feature 4 (freq='t' only)

    # All FixedEmbedding tables are the identical deterministic sinusoidal
    # (1024, d_model) table -> a single shared parameter.
    w_table = fixed_embedding_table(d_model)

    # freq='h' path (4 features used)
    x_mark4 = jnp.stack([month, day, weekday, hour], axis=-1).astype(jnp.int32)
    out_h = jax.block_until_ready(temporal_embedding(x_mark4, w_table, freq="h"))
    ref_h = (w_table[x_mark4[:, :, 3]]
             + w_table[x_mark4[:, :, 2]]
             + w_table[x_mark4[:, :, 1]]
             + w_table[x_mark4[:, :, 0]])
    assert out_h.shape == (B, L, d_model)
    assert jnp.allclose(out_h, ref_h, atol=1e-5, rtol=1e-5)

    # freq='t' path (5 features, minute embedding added)
    x_mark5 = jnp.stack([month, day, weekday, hour, minute], axis=-1).astype(jnp.int32)
    out_t = jax.block_until_ready(temporal_embedding(x_mark5, w_table, freq="t"))
    ref_t = ref_h + w_table[x_mark5[:, :, 4]]
    assert jnp.allclose(out_t, ref_t, atol=1e-5, rtol=1e-5)

    print("KERNEL_OK")
</pallas_src>

<mosaic_0001>
module attributes {stable_mosaic.version = 11 : i64} {
  func.func @_temporal_embed_kernel(%arg0: i32, %arg1: memref<16x4xi32, #tpu.memory_space<vmem>>, %arg2: memref<128x128xf32, #tpu.memory_space<vmem>>, %arg3: memref<16x128xf32, #tpu.memory_space<vmem>>) attributes {dimension_semantics = [#tpu.dimension_semantics<parallel>], iteration_bounds = array<i64: 1>, scalar_prefetch = 0 : i64, scratch_operands = 0 : i64, tpu.core_type = #tpu.core_type<tc>, window_params = [{transform_indices = @transform_0, window_bounds = array<i64: 16, 4>}, {pipeline_mode = #tpu.pipeline_mode<synchronous>, transform_indices = @transform_1, window_bounds = array<i64: 128, 128>}, {transform_indices = @transform_2, window_bounds = array<i64: 16, 128>}]} {
    %c0 = arith.constant 0 : index
    %c0_0 = arith.constant 0 : index
    %0 = vector.load %arg1[%c0, %c0_0] : memref<16x4xi32, #tpu.memory_space<vmem>>, vector<16x4xi32>
    %1 = tpu.iota {dimensions = array<i32: 1>} : vector<16x128xi32>
    %cst = arith.constant 0.000000e+00 : f32
    %2 = vector.broadcast %cst : f32 to vector<16x128xf32>
    %3 = vector.extract_strided_slice %0 {offsets = [0, 0], sizes = [16, 1], strides = [1, 1]} : vector<16x4xi32> to vector<16x1xi32>
    %4 = vector.shape_cast %3 : vector<16x1xi32> to vector<16xi32>
    %5 = vector.shape_cast %4 : vector<16xi32> to vector<16x1xi32>
    %6 = vector.broadcast %5 : vector<16x1xi32> to vector<16x128xi32>
    %7 = arith.cmpi eq, %1, %6 : vector<16x128xi32>
    %cst_1 = arith.constant 1.000000e+00 : f32
    %cst_2 = arith.constant 0.000000e+00 : f32
    %8 = vector.broadcast %cst_1 : f32 to vector<16x128xf32>
    %9 = vector.broadcast %cst_2 : f32 to vector<16x128xf32>
    %10 = arith.select %7, %8, %9 : vector<16x128xi1>, vector<16x128xf32>
    %11 = arith.addf %2, %10 : vector<16x128xf32>
    %12 = vector.extract_strided_slice %0 {offsets = [0, 1], sizes = [16, 1], strides = [1, 1]} : vector<16x4xi32> to vector<16x1xi32>
    %13 = vector.shape_cast %12 : vector<16x1xi32> to vector<16xi32>
    %14 = vector.shape_cast %13 : vector<16xi32> to vector<16x1xi32>
    %15 = vector.broadcast %14 : vector<16x1xi32> to vector<16x128xi32>
    %16 = arith.cmpi eq, %1, %15 : vector<16x128xi32>
    %cst_3 = arith.constant 1.000000e+00 : f32
    %cst_4 = arith.constant 0.000000e+00 : f32
    %17 = vector.broadcast %cst_3 : f32 to vector<16x128xf32>
    %18 = vector.broadcast %cst_4 : f32 to vector<16x128xf32>
    %19 = arith.select %16, %17, %18 : vector<16x128xi1>, vector<16x128xf32>
    %20 = arith.addf %11, %19 : vector<16x128xf32>
    %21 = vector.extract_strided_slice %0 {offsets = [0, 2], sizes = [16, 1], strides = [1, 1]} : vector<16x4xi32> to vector<16x1xi32>
    %22 = vector.shape_cast %21 : vector<16x1xi32> to vector<16xi32>
    %23 = vector.shape_cast %22 : vector<16xi32> to vector<16x1xi32>
    %24 = vector.broadcast %23 : vector<16x1xi32> to vector<16x128xi32>
    %25 = arith.cmpi eq, %1, %24 : vector<16x128xi32>
    %cst_5 = arith.constant 1.000000e+00 : f32
    %cst_6 = arith.constant 0.000000e+00 : f32
    %26 = vector.broadcast %cst_5 : f32 to vector<16x128xf32>
    %27 = vector.broadcast %cst_6 : f32 to vector<16x128xf32>
    %28 = arith.select %25, %26, %27 : vector<16x128xi1>, vector<16x128xf32>
    %29 = arith.addf %20, %28 : vector<16x128xf32>
    %30 = vector.extract_strided_slice %0 {offsets = [0, 3], sizes = [16, 1], strides = [1, 1]} : vector<16x4xi32> to vector<16x1xi32>
    %31 = vector.shape_cast %30 : vector<16x1xi32> to vector<16xi32>
    %32 = vector.shape_cast %31 : vector<16xi32> to vector<16x1xi32>
    %33 = vector.broadcast %32 : vector<16x1xi32> to vector<16x128xi32>
    %34 = arith.cmpi eq, %1, %33 : vector<16x128xi32>
    %cst_7 = arith.constant 1.000000e+00 : f32
    %cst_8 = arith.constant 0.000000e+00 : f32
    %35 = vector.broadcast %cst_7 : f32 to vector<16x128xf32>
    %36 = vector.broadcast %cst_8 : f32 to vector<16x128xf32>
    %37 = arith.select %34, %35, %36 : vector<16x128xi1>, vector<16x128xf32>
    %38 = arith.addf %29, %37 : vector<16x128xf32>
    %c0_9 = arith.constant 0 : index
    %c0_10 = arith.constant 0 : index
    %39 = vector.load %arg2[%c0_9, %c0_10] : memref<128x128xf32, #tpu.memory_space<vmem>>, vector<128x128xf32>
    %cst_11 = arith.constant dense<0.000000e+00> : vector<16x128xf32>
    %40 = tpu.matmul %38, %39, %cst_11 {dimension_numbers = #tpu.dot_dimension_numbers<[1], [0], [0], [1], [0, 0, 1, 1], [], []>} : vector<16x128xf32>, vector<128x128xf32>, vector<16x128xf32> -> vector<16x128xf32>
    %c0_12 = arith.constant 0 : index
    %c0_13 = arith.constant 0 : index
    %41 = vector.load %arg3[%c0_12, %c0_13] : memref<16x128xf32, #tpu.memory_space<vmem>>, vector<16x128xf32>
    tpu.vector_store %arg3[%c0_12, %c0_13], %40 {strides = array<i32>} : memref<16x128xf32, #tpu.memory_space<vmem>>, vector<16x128xf32>,
    return
  }
  func.func @transform_0(%arg0: i32) -> (i32, i32) {
    %c0_i32 = arith.constant 0 : i32
    %c0_i32_0 = arith.constant 0 : i32
    return %arg0, %c0_i32 : i32, i32
  }
  func.func @transform_1(%arg0: i32) -> (i32, i32) {
    %c0_i32 = arith.constant 0 : i32
    %c0_i32_0 = arith.constant 0 : i32
    %c0_i32_1 = arith.constant 0 : i32
    return %c0_i32, %c0_i32_0 : i32, i32
  }
  func.func @transform_2(%arg0: i32) -> (i32, i32) {
    %c0_i32 = arith.constant 0 : i32
    %c0_i32_0 = arith.constant 0 : i32
    return %arg0, %c0_i32 : i32, i32
  }
}

</mosaic_0001>

<bundles_post_ra>
// kernel: tpu_custom_call.1
= control target key start
LH: loop header
LB: loop body
LE: loop exit
PB: predicated region body
PF: predicated region fallthrough
CT: control target
= control target key end

     0   :  { %7 = vsyncpa [#allocation3], 0  ;;  %s398_s0 = inlined_call_operand.vmem [shape: s32[16,4], index: 0, kind: input, shape index: {}]   ;;  %s399_s1 = inlined_call_operand.hbm [shape: f32[128,128], index: 1, kind: input, shape index: {}]   ;;  %s400_s2 = inlined_call_operand.hbm [shape: f32[16,128], index: 2, kind: output, shape index: {}]  }
   0x1   :  { %8 = vsyncpa [#allocation4], 0  ;;  %s338_s9 = smov [#allocation2]   ;;  %s290_s13 = scalar_lea.hbm %s399_s1, 2048 }
   0x2   :  { %s16_s10 = sshll.u32 %s338_s9, 4  ;;  %p291_p0 = scmp.ne.s32.totalorder %s399_s1, %s290_s13  ;;  %s17_s10 = int_to_ptr.vmem [resolvable:$true] %s16_s10 }
   0x3   :  { %p294_p1 = scmp.lt.u32.totalorder %s290_s13, %s399_s1 }
   0x5   :  { %p296_p2 = pnand %p294_p1, %p291_p0 }
   0x7   :  { %299 = shalt.err (!%p296_p2)
}
   0x8   :  { %s300_s18 = scalar_lea.vmem %s17_s10, 2048  ;;  %p305_p4 = scmp.lt.s32.totalorder %s17_s10, %s17_s10 }
   0x9   :  { %p301_p3 = scmp.ne.s32.totalorder %s17_s10, %s300_s18  ;;  %p306_p5 = scmp.lt.s32.totalorder %s300_s18, %s300_s18 }
   0xb   :  { %p307_p6 = por %p306_p5, %p305_p4 }
   0xd   :  { %p308_p7 = pnand %p307_p6, %p301_p3 }
   0xf   :  { %311 = shalt.err (!%p308_p7)
}
  0x10   :  { %s339_s19 = smov 128   ;;  %s340_s20 = smov 8  }
  0x11   :  { %22 = dma.hbm_to_vmem [thread:$0]  %s399_s1, 2048, %s17_s10, [#allocation3], %s339_s19, %s339_s19, %s340_s20  }
  0x12   :  { %334 = dma.done.wait [#allocation3], 2048  }
  0x13   :  { %335 = vsyncadd [#allocation3], 4294965248  ;;  %v341_v0 = vmov 0   ;;  %v27_v1 = vld [vmem:[%s398_s0 + $0x8] sm:$0xff]  ;;  %v26_v2 = vld [vmem:[%s398_s0] sm:$0xff]  ;;  %v342_v9 = vmov 1   ;;  %v28_v30 = vlaneseq }
  0x14   :  { %284 = vset.pattern.permute.xlu1 %v341_v0  ;;  %282 = vset.pattern.permute.xlu0 %v341_v0  ;;  %v78_v3 = vld [vmem:[#allocation2] sm:$0xff]  ;;  %v79_v4 = vld [vmem:[#allocation2 + $0x8] sm:$0xff]  ;;  %v80_v5 = vld [vmem:[#allocation2 + $0x10] sm:$0xff]  ;;  %v343_v13 = vmov 2   ;;  %v344_v19 = vmov 3   ;;  %v345_v36 = vmov 0.0  }
  0x15   :  { %34 = vperm.xlu1 %284, %v27_v1   ;;  %31 = vperm.xlu0 %282, %v26_v2   ;;  %v81_v6 = vld [vmem:[#allocation2 + $0x18] sm:$0xff]  ;;  %v241_v7 = vpack.c.bf16 %v79_v4, %v78_v3  ;;  %v82_v10 = vld [vmem:[#allocation2 + $0x20] sm:$0xff]  ;;  %v83_v11 = vld [vmem:[#allocation2 + $0x28] sm:$0xff]  ;;  %v29_v33 = vand.u32 127, %v28_v30  ;;  %s346_s0 = smov [#allocation5]  }
  0x16   :  { %v245_v8 = vpack.c.bf16 %v81_v6, %v80_v5  ;;  %v249_v12 = vpack.c.bf16 %v83_v11, %v82_v10  ;;  %v84_v14 = vld [vmem:[#allocation2 + $0x30] sm:$0xff]  ;;  %v85_v15 = vld [vmem:[#allocation2 + $0x38] sm:$0xff]  ;;  %v86_v17 = vld [vmem:[#allocation2 + $0x40] sm:$0xff]  ;;  %s176_s1 = sshll.u32 %s346_s0, 4  ;;  %s177_s1 = int_to_ptr.vmem [resolvable:$true] %s176_s1 }
  0x17   :  { %242 = vmatprep.subr.bf16.mxu0 %v241_v7  ;;  %v253_v16 = vpack.c.bf16 %v85_v15, %v84_v14  ;;  %v87_v18 = vld [vmem:[#allocation2 + $0x48] sm:$0xff]  ;;  %v88_v21 = vld [vmem:[#allocation2 + $0x50] sm:$0xff]  ;;  %v89_v22 = vld [vmem:[#allocation2 + $0x58] sm:$0xff]  ;;  %s312_s27 = scalar_lea.vmem %s177_s1, 256  ;;  %p317_p9 = scmp.lt.s32.totalorder %s177_s1, %s177_s1 }
  0x18   :  { %244 = vmatpush3.bf16.msra.mxu0 %v241_v7  ;;  %v257_v20 = vpack.c.bf16 %v87_v18, %v86_v17  ;;  %v261_v23 = vpack.c.bf16 %v89_v22, %v88_v21  ;;  %v90_v24 = vld [vmem:[#allocation2 + $0x60] sm:$0xff]  ;;  %v91_v25 = vld [vmem:[#allocation2 + $0x68] sm:$0xff]  ;;  %v92_v27 = vld [vmem:[#allocation2 + $0x70] sm:$0xff]  ;;  %p313_p8 = scmp.ne.s32.totalorder %s177_s1, %s312_s27  ;;  %p318_p10 = scmp.lt.s32.totalorder %s312_s27, %s312_s27 }
  0x19   :  { %285 = vset.pattern.permute.xlu1 %v342_v9  ;;  %283 = vset.pattern.permute.xlu0 %v342_v9  ;;  %v265_v26 = vpack.c.bf16 %v91_v25, %v90_v24  ;;  %v93_v28 = vld [vmem:[#allocation2 + $0x78] sm:$0xff] }
  0x1a   :  { %46 = vperm.xlu1 %285, %v27_v1   ;;  %43 = vperm.xlu0 %283, %v26_v2   ;;  %v269_v29 = vpack.c.bf16 %v93_v28, %v92_v27  ;;  %p319_p11 = por %p318_p10, %p317_p9 }
  0x1b   :  { %246 = vmatprep.subr.bf16.mxu0 %v245_v8 }
  0x1c   :  { %248 = vmatpush3.bf16.msra.mxu0 %v245_v8  ;;  %p320_p12 = pnand %p319_p11, %p313_p8 }
  0x1d   :  { %250 = vmatprep.subr.bf16.mxu0 %v249_v12 }
  0x1e   :  { %286 = vset.pattern.permute.xlu1 %v343_v13  ;;  %287 = vset.pattern.permute.xlu0 %v343_v13 }
  0x1f   :  { %55 = vperm.xlu1 %286, %v26_v2   ;;  %58 = vperm.xlu0 %287, %v27_v1  }
  0x20   :  { %252 = vmatpush3.bf16.msra.mxu0 %v249_v12 }
  0x21   :  { %254 = vmatprep.subr.bf16.mxu0 %v253_v16 }
  0x23   :  { %288 = vset.pattern.permute.xlu1 %v344_v19  ;;  %289 = vset.pattern.permute.xlu0 %v344_v19 }
  0x24   :  { %67 = vperm.xlu1 %288, %v26_v2   ;;  %256 = vmatpush3.bf16.msra.mxu0 %v253_v16 }
  0x25   :  { %258 = vmatprep.subr.bf16.mxu0 %v257_v20 }
  0x28   :  { %70 = vperm.xlu1 %288, %v27_v1   ;;  %260 = vmatpush3.bf16.msra.mxu0 %v257_v20 }
  0x29   :  { %262 = vmatprep.subr.bf16.mxu0 %v261_v23 }
  0x2c   :  { %264 = vmatpush3.bf16.msra.mxu0 %v261_v23 }
  0x2d   :  { %266 = vmatprep.subr.bf16.mxu0 %v265_v26 }
  0x30   :  { %268 = vmatpush3.bf16.msra.mxu0 %v265_v26 }
  0x31   :  { %270 = vmatprep.subr.bf16.mxu0 %v269_v29 }
  0x34   :  { %272 = vmatpush3.bf16.msra.mxu0 %v269_v29 }
  0x94   :  { %v35_v31 = vpop.permute.xlu1 %34  ;;  %v32_v32 = vpop.permute.xlu0 %31 }
  0x95   :  { %vm36_vm0 = vcmp.eq.s32.totalorder %v29_v33, %v32_v32  ;;  %vm37_vm4 = vcmp.eq.s32.totalorder %v29_v33, %v35_v31 }
  0x96   :  { %v38_v37 = vsel %vm36_vm0, 1.0, %v345_v36  ;;  %v39_v46 = vsel %vm37_vm4, 1.0, %v345_v36 }
  0x99   :  { %v47_v34 = vpop.permute.xlu1 %46  ;;  %v44_v35 = vpop.permute.xlu0 %43 }
  0x9a   :  { %vm48_vm1 = vcmp.eq.s32.totalorder %v29_v33, %v44_v35  ;;  %vm49_vm3 = vcmp.eq.s32.totalorder %v29_v33, %v47_v34 }
  0x9b   :  { %v50_v38 = vsel %vm48_vm1, 1.0, %v345_v36  ;;  %v51_v43 = vsel %vm49_vm3, 1.0, %v345_v36 }
  0x9c   :  { %v52_v41 = vadd.f32 %v50_v38, %v38_v37  ;;  %v53_v49 = vadd.f32 %v51_v43, %v39_v46 }
  0x9e   :  { %v56_v39 = vpop.permute.xlu1 %55  ;;  %v59_v40 = vpop.permute.xlu0 %58 }
  0x9f   :  { %vm60_vm2 = vcmp.eq.s32.totalorder %v29_v33, %v56_v39  ;;  %vm61_vm5 = vcmp.eq.s32.totalorder %v29_v33, %v59_v40 }
  0xa0   :  { %v62_v42 = vsel %vm60_vm2, 1.0, %v345_v36  ;;  %v63_v47 = vsel %vm61_vm5, 1.0, %v345_v36 }
  0xa1   :  { %v64_v45 = vadd.f32 %v62_v42, %v52_v41  ;;  %v65_v52 = vadd.f32 %v63_v47, %v53_v49 }
  0xa3   :  { %v68_v44 = vpop.permute.xlu1 %67 }
  0xa4   :  { %vm72_vm6 = vcmp.eq.s32.totalorder %v29_v33, %v68_v44 }
  0xa5   :  { %v74_v48 = vsel %vm72_vm6, 1.0, %v345_v36 }
  0xa6   :  { %v76_v50 = vadd.f32 %v74_v48, %v64_v45 }
  0xa7   :  { %v71_v51 = vpop.permute.xlu1 %70 }
  0xa8   :  { %vm73_vm7 = vcmp.eq.s32.totalorder %v29_v33, %v71_v51  ;;  %238 = vmatprep.mubr.f32.mxu0 %v76_v50 }
  0xa9   :  { %v75_v53 = vsel %vm73_vm7, 1.0, %v345_v36 }
  0xaa   :  { %v77_v54 = vadd.f32 %v75_v53, %v65_v52 }
  0xac   :  { %239 = vmatmul.mubr.f32.vlgmr.msra.gmra.mrb[0].mxu0 %v77_v54 }
 0x17f   :  { %v240_v55 = vpop.f32.mrb[0].mxu0 }
 0x180   :  { %170 = vst [vmem:[#allocation5 + $0x8] sm:$0xff] %v240_v55  ;;  %v160_v56 = vpop.f32.mrb[1].mxu0 }
 0x181   :  { %169 = vst [vmem:[#allocation5] sm:$0xff] %v160_v56 }
 0x182   :  { %323 = shalt.err (!%p320_p12)
}
 0x183   :  { %s324_s30 = scalar_lea.hbm %s400_s2, 256 }
 0x184   :  { %p325_p13 = scmp.ne.s32.totalorder %s400_s2, %s324_s30  ;;  %p328_p0 = scmp.lt.u32.totalorder %s324_s30, %s400_s2 }
 0x186   :  { %p330_p1 = pnand %p328_p0, %p325_p13 }
 0x188   :  { %333 = shalt.err (!%p330_p1)
}
 0x189   :  { %182 = dma.vmem_to_hbm [thread:$0]  %s177_s1, 256, %s400_s2, [#allocation4], %s339_s19, %s339_s19, %s340_s20  }
 0x18a   :  { %336 = dma.done.wait [#allocation4], 256  }
 0x18b   :  { %337 = vsyncadd [#allocation4], 4294967040 }
 0x18c   :  { %186 = vsyncpa [#allocation3], 1 }
 0x18d   :  { %187 = vsyncpa [#allocation4], 1 }

</bundles_post_ra>
